<compile_context>
chip_gen: v7x
topology: tpu7x:2x2x1
jax: 0.10.0
libtpu: 0.0.40
codegen_flags: <defaults>
</compile_context>

<pallas_src>
import jax
import jax.numpy as jnp
from jax.experimental import pallas as pl
from jax.experimental.pallas import tpu as pltpu


# ---------------------------------------------------------------------------
# Kernels
# ---------------------------------------------------------------------------
def _embed_kernel_dt(p_ref, w_ref, b_ref, o_ref):
    """(D, T)-oriented kernel: lane-dense along T (large-T path).

    p_ref: (P, tile_t)       patches^T for one series / T-tile
    w_ref: (tile_d, P)       conv weight slice
    b_ref: (tile_d, 1)       bias slice
    o_ref: (tile_d, tile_t)  output block in (D, T) orientation
    """
    o_ref[...] = (
        jnp.dot(w_ref[...], p_ref[...], preferred_element_type=jnp.float32)
        + b_ref[...]
    ).astype(o_ref.dtype)


def _embed_kernel_rows(p_ref, w_ref, b_ref, o_ref):
    """Row-major kernel: lane-dense along D (small-T path, T < 128).

    p_ref: (tile_r, P)   flattened (series, t) patch rows
    w_ref: (P, D)        conv weight, transposed
    b_ref: (1, D)        bias row
    o_ref: (tile_r, D)
    """
    o_ref[...] = (
        jnp.dot(p_ref[...], w_ref[...], preferred_element_type=jnp.float32)
        + b_ref[...]
    ).astype(o_ref.dtype)


# ---------------------------------------------------------------------------
# Tile-size helpers
# ---------------------------------------------------------------------------
def _pick_divisor(dim, candidates):
    for c in candidates:
        if c <= dim and dim % c == 0:
            return c
    return dim  # full (untiled) dimension is always legal


def _pick_tile_t(T, max_t):
    """Largest legal lane-dim tile: full T if it fits the budget, else the
    biggest 128-multiple divisor (lane blocks must be 128-multiples or full)."""
    if T <= max_t:
        return T
    c = (max_t // 128) * 128
    while c >= 128:
        if T % c == 0:
            return c
        c -= 128
    return T  # pathological factorization: fall back to the full extent


def _pick_tile_rows(R, max_r):
    """Largest legal sublane (row) tile: full R if it fits, else the biggest
    8-multiple divisor (sublane blocks must be 8-multiples or full)."""
    if R <= max_r:
        return R
    c = (max_r // 8) * 8
    while c >= 8:
        if R % c == 0:
            return c
        c -= 8
    return R


# ---------------------------------------------------------------------------
# Forward
# ---------------------------------------------------------------------------
def embedding_forward(x, weight, bias, P=8, S=4, out_dtype=jnp.float32):
    """x: (B, M, L) f32; weight: (D, 1, P); bias: (D,). Returns (B, M, D, T).

    out_dtype=jnp.bfloat16 halves the dominant HBM write stream (numerics
    change vs. the PyTorch f32 reference; default keeps f32).
    """
    B, M, L = x.shape
    D = weight.shape[0]
    assert weight.shape == (D, 1, P), weight.shape
    assert P >= S, "replicate pad length P - S must be non-negative"
    assert L % S == 0, "Conv1d + replicate-pad semantics assume L % S == 0"

    N = B * M
    T = L // S
    pad_len = P - S
    itemsize = jnp.dtype(out_dtype).itemsize

    # --- cheap JAX glue: replicate pad + strided patch extraction -----------
    # TODO(synk): fold pad/patch extraction into the kernel (in-kernel strided
    # lane slices); skipped since it is only ~3-5% of total HBM traffic.
    xf = x.reshape(N, L).astype(jnp.float32)
    if pad_len > 0:
        x_pad = jnp.concatenate(
            [xf, jnp.repeat(xf[:, -1:], pad_len, axis=-1)], axis=-1
        )  # (N, L + P - S)
    else:
        x_pad = xf
    # rows[p][n, t] = x_pad[n, t*S + p]  -- P cheap strided slices, no gather.
    rows = [x_pad[:, p : p + (T - 1) * S + 1 : S] for p in range(P)]  # each (N, T)

    w2 = weight[:, 0, :].astype(jnp.float32)  # (D, P)

    OUT_BUF_BUDGET = 8 << 20  # bytes per output buffer (x2 for double buffering)

    if T >= 128:
        # -------------- large-T path: (D, T) blocks, lane-dense along T -----
        patches_t = jnp.stack(rows, axis=1)           # (N, P, T): P sublanes, T lanes
        b2 = bias.reshape(D, 1).astype(jnp.float32)   # (D, 1)

        # Prefer spending VMEM on tile_t (lane density / HBM contiguity), not tile_d.
        tile_d = D if D <= 512 else _pick_divisor(D, (256, 512, 128, 64, 32, 16, 8))
        n_j = D // tile_d
        max_t = max(128, OUT_BUF_BUDGET // (tile_d * itemsize))
        tile_t = _pick_tile_t(T, max_t)
        # Keep >= a few grid steps so v7x's two TensorCores both get work.
        while (N * n_j * (T // tile_t)) < 4 and tile_t % 256 == 0:
            tile_t //= 2
        n_t = T // tile_t

        est_vmem = (
            2 * tile_d * tile_t * itemsize   # double-buffered output blocks
            + 2 * P * tile_t * 4             # double-buffered patch tiles
            + 2 * tile_d * (P + 1) * 4       # weight + bias (resident)
        )
        vmem_limit = int(min(48 << 20, max(32 << 20, 2 * est_vmem)))

        if n_j == 1:
            # Full (D, P) weight resident; no D-tile grid axis at all.
            grid = (N, n_t)
            in_specs = [
                pl.BlockSpec((None, P, tile_t), lambda n, t: (n, 0, t)),
                pl.BlockSpec((D, P), lambda n, t: (0, 0)),
                pl.BlockSpec((D, 1), lambda n, t: (0, 0)),
            ]
            out_spec = pl.BlockSpec((None, D, tile_t), lambda n, t: (n, 0, t))
            dims = ("parallel", "parallel")
        else:
            grid = (N, n_j, n_t)
            in_specs = [
                pl.BlockSpec((None, P, tile_t), lambda n, j, t: (n, 0, t)),
                pl.BlockSpec((tile_d, P), lambda n, j, t: (j, 0)),
                pl.BlockSpec((tile_d, 1), lambda n, j, t: (j, 0)),
            ]
            out_spec = pl.BlockSpec(
                (None, tile_d, tile_t), lambda n, j, t: (n, j, t)
            )
            dims = ("parallel", "parallel", "parallel")

        out = pl.pallas_call(
            _embed_kernel_dt,
            out_shape=jax.ShapeDtypeStruct((N, D, T), out_dtype),
            grid_spec=pltpu.PrefetchScalarGridSpec(
                num_scalar_prefetch=0,
                grid=grid,
                in_specs=in_specs,
                out_specs=out_spec,
            ),
            compiler_params=pltpu.CompilerParams(
                dimension_semantics=dims,
                vmem_limit_bytes=vmem_limit,
            ),
        )(patches_t, w2, b2)
        # (B*M, D, T) -> (B, M, D, T): a free reshape, no HBM transpose.
        return out.reshape(B, M, D, T)

    # ---------------- small-T path (T < 128): (rows, D) blocks --------------
    # A (tile_d, T<128) output block would hit masked, lane-sparse vst.msk
    # stores.  Flip orientation so D (usually a 128-multiple) is on lanes and
    # fix the layout with a cheap wrapper-side transpose (data is small here).
    patches = jnp.stack(rows, axis=-1).reshape(N * T, P)   # (N*T, P)
    wT = w2.T                                              # (P, D)
    b2 = bias.reshape(1, D).astype(jnp.float32)            # (1, D)
    NT = N * T

    max_r = max(8, OUT_BUF_BUDGET // (D * itemsize))
    tile_r = _pick_tile_rows(NT, max_r)
    n_r = NT // tile_r

    est_vmem = 2 * tile_r * D * itemsize + 2 * tile_r * P * 4 + 2 * (P + 1) * D * 4
    vmem_limit = int(min(48 << 20, max(32 << 20, 2 * est_vmem)))

    out = pl.pallas_call(
        _embed_kernel_rows,
        out_shape=jax.ShapeDtypeStruct((NT, D), out_dtype),
        grid_spec=pltpu.PrefetchScalarGridSpec(
            num_scalar_prefetch=0,
            grid=(n_r,),
            in_specs=[
                pl.BlockSpec((tile_r, P), lambda r: (r, 0)),
                pl.BlockSpec((P, D), lambda r: (0, 0)),
                pl.BlockSpec((1, D), lambda r: (0, 0)),
            ],
            out_specs=pl.BlockSpec((tile_r, D), lambda r: (r, 0)),
        ),
        compiler_params=pltpu.CompilerParams(
            dimension_semantics=("parallel",),
            vmem_limit_bytes=vmem_limit,
        ),
    )(patches, wT, b2)
    # (N*T, D) -> (B, M, D, T); T < 128 so this transpose is cheap.
    return out.reshape(B, M, T, D).transpose(0, 1, 3, 2)


# ---------------------------------------------------------------------------
# Self-test
# ---------------------------------------------------------------------------
if __name__ == "__main__":
    def reference(x, weight, bias, P, S):
        pad_len = P - S
        if pad_len > 0:
            x_pad = jnp.concatenate(
                [x, jnp.repeat(x[..., -1:], pad_len, axis=-1)], axis=-1
            )
        else:
            x_pad = x
        T = x.shape[-1] // S
        idx = jnp.arange(T)[:, None] * S + jnp.arange(P)[None, :]
        patches = x_pad[..., idx]  # (B, M, T, P)
        return (
            jnp.einsum("bmtp,dp->bmdt", patches, weight[:, 0, :])
            + bias[None, None, :, None]
        )

    key = jax.random.PRNGKey(0)
    P, S, D = 8, 4, 256

    # Case 1: module-consistent small shapes (T = 4 -> small-T, D-on-lanes path).
    B, M, L = 2, 3, 16
    k1, k2, k3, key = jax.random.split(key, 4)
    x = jax.random.normal(k1, (B, M, L), dtype=jnp.float32)
    w = jax.random.normal(k2, (D, 1, P), dtype=jnp.float32) * 0.05
    b = jax.random.normal(k3, (D,), dtype=jnp.float32) * 0.05
    out = jax.block_until_ready(embedding_forward(x, w, b, P=P, S=S))
    assert out.shape == (B, M, D, L // S), out.shape
    assert jnp.allclose(out, reference(x, w, b, P, S), atol=1e-4, rtol=1e-4)

    # Case 2: T = 256 -> tiled, lane-dense (D, T) path (multi-step t axis).
    B2, M2, L2 = 1, 2, 1024
    k1, k2, k3, key = jax.random.split(key, 4)
    x2 = jax.random.normal(k1, (B2, M2, L2), dtype=jnp.float32)
    w2 = jax.random.normal(k2, (D, 1, P), dtype=jnp.float32) * 0.05
    b2 = jax.random.normal(k3, (D,), dtype=jnp.float32) * 0.05
    out2 = jax.block_until_ready(embedding_forward(x2, w2, b2, P=P, S=S))
    assert out2.shape == (B2, M2, D, L2 // S), out2.shape
    assert jnp.allclose(out2, reference(x2, w2, b2, P, S), atol=1e-4, rtol=1e-4)

    print("KERNEL_OK")
</pallas_src>

<mosaic_0001>
module attributes {stable_mosaic.version = 11 : i64} {
  func.func @_embed_kernel_rows(%arg0: i32, %arg1: memref<24x8xf32, #tpu.memory_space<vmem>>, %arg2: memref<8x256xf32, #tpu.memory_space<vmem>>, %arg3: memref<1x256xf32, #tpu.memory_space<vmem>>, %arg4: memref<24x256xf32, #tpu.memory_space<vmem>>) attributes {dimension_semantics = [#tpu.dimension_semantics<parallel>], iteration_bounds = array<i64: 1>, scalar_prefetch = 0 : i64, scratch_operands = 0 : i64, tpu.core_type = #tpu.core_type<tc>, window_params = [{transform_indices = @transform_0, window_bounds = array<i64: 24, 8>}, {pipeline_mode = #tpu.pipeline_mode<synchronous>, transform_indices = @transform_1, window_bounds = array<i64: 8, 256>}, {pipeline_mode = #tpu.pipeline_mode<synchronous>, transform_indices = @transform_2, window_bounds = array<i64: 1, 256>}, {transform_indices = @transform_3, window_bounds = array<i64: 24, 256>}]} {
    %c0 = arith.constant 0 : index
    %c0_0 = arith.constant 0 : index
    %0 = vector.load %arg1[%c0, %c0_0] : memref<24x8xf32, #tpu.memory_space<vmem>>, vector<24x8xf32>
    %c0_1 = arith.constant 0 : index
    %c0_2 = arith.constant 0 : index
    %1 = vector.load %arg2[%c0_1, %c0_2] : memref<8x256xf32, #tpu.memory_space<vmem>>, vector<8x256xf32>
    %cst = arith.constant dense<0.000000e+00> : vector<24x256xf32>
    %2 = tpu.matmul %0, %1, %cst {dimension_numbers = #tpu.dot_dimension_numbers<[1], [0], [0], [1], [0, 0, 1, 1], [], []>} : vector<24x8xf32>, vector<8x256xf32>, vector<24x256xf32> -> vector<24x256xf32>
    %c0_3 = arith.constant 0 : index
    %c0_4 = arith.constant 0 : index
    %3 = vector.load %arg3[%c0_3, %c0_4] : memref<1x256xf32, #tpu.memory_space<vmem>>, vector<1x256xf32>
    %4 = vector.broadcast %3 : vector<1x256xf32> to vector<24x256xf32>
    %5 = arith.addf %2, %4 : vector<24x256xf32>
    %c0_5 = arith.constant 0 : index
    %c0_6 = arith.constant 0 : index
    %6 = vector.load %arg4[%c0_5, %c0_6] : memref<24x256xf32, #tpu.memory_space<vmem>>, vector<24x256xf32>
    tpu.vector_store %arg4[%c0_5, %c0_6], %5 {strides = array<i32>} : memref<24x256xf32, #tpu.memory_space<vmem>>, vector<24x256xf32>,
    return
  }
  func.func @transform_0(%arg0: i32) -> (i32, i32) {
    %c0_i32 = arith.constant 0 : i32
    %c0_i32_0 = arith.constant 0 : i32
    return %arg0, %c0_i32 : i32, i32
  }
  func.func @transform_1(%arg0: i32) -> (i32, i32) {
    %c0_i32 = arith.constant 0 : i32
    %c0_i32_0 = arith.constant 0 : i32
    %c0_i32_1 = arith.constant 0 : i32
    return %c0_i32, %c0_i32_0 : i32, i32
  }
  func.func @transform_2(%arg0: i32) -> (i32, i32) {
    %c0_i32 = arith.constant 0 : i32
    %c0_i32_0 = arith.constant 0 : i32
    %c0_i32_1 = arith.constant 0 : i32
    return %c0_i32, %c0_i32_0 : i32, i32
  }
  func.func @transform_3(%arg0: i32) -> (i32, i32) {
    %c0_i32 = arith.constant 0 : i32
    %c0_i32_0 = arith.constant 0 : i32
    return %arg0, %c0_i32 : i32, i32
  }
}

</mosaic_0001>

<bundles_post_ra>
// kernel: tpu_custom_call.1
= control target key start
LH: loop header
LB: loop body
LE: loop exit
PB: predicated region body
PF: predicated region fallthrough
CT: control target
= control target key end

     0   :  { %vm32_vm0 = vcmask 64512   ;;  %v180_v3 = vmov 0.0   ;;  %s234_s0 = inlined_call_operand.vmem [shape: f32[24,8], index: 0, kind: input, shape index: {}]   ;;  %s235_s1 = inlined_call_operand.vmem [shape: f32[8,256], index: 1, kind: input, shape index: {}]   ;;  %s236_s2 = inlined_call_operand.vmem [shape: f32[1,256], index: 2, kind: input, shape index: {}]   ;;  %s237_s3 = inlined_call_operand.hbm [shape: f32[24,256], index: 3, kind: output, shape index: {}]  }
   0x1   :  { %v19_v0 = vld [vmem:[%s235_s1 + $0x8] sm:$0xff]  ;;  %v18_v1 = vld [vmem:[%s235_s1] sm:$0xff]  ;;  %112 = vmatprep.mubr.f32.mxu1 %v180_v3 }
   0x2   :  { %v16_v2 = vld [vmem:[%s234_s0 + $0x8] sm:$0xff]  ;;  %150 = vmatprep.subr.mxu1 %v19_v0  ;;  %42 = vmatprep.subr.mxu0 %v19_v0  ;;  %v15_v4 = vld [vmem:[%s234_s0] sm:$0xff] }
   0x3   :  { %151 = vmatpush1.msra.mxu1 %v18_v1 }
   0x4   :  { %8 = vsyncpa [#allocation3], 0  ;;  %148 = vmatmul.mubr.msk.f32.vlgmr.msra.gmra.mrb[0].mxu1 %vm32_vm0, %v16_v2  ;;  %43 = vmatpush1.msra.mxu0 %v18_v1  ;;  %v17_v5 = vld [vmem:[%s234_s0 + $0x10] sm:$0xff]  ;;  %v22_v6 = vlaneseq  ;;  %v20_v9 = vld [vmem:[%s236_s2] sm:$0x3]  ;;  %s181_s23 = smov [#allocation2]  }
   0x5   :  { %106 = vmatprep.mubr.f32.mxu0 %v180_v3  ;;  %118 = vmatprep.mubr.f32.mxu1 %v180_v3  ;;  %s136_s24 = sshll.u32 %s181_s23, 4  ;;  %s137_s24 = int_to_ptr.vmem [resolvable:$true] %s136_s24 }
   0x6   :  { %147 = vmatmul.mubr.msk.f32.vlgmr.msra.gmra.mrb[0].mxu0 %vm32_vm0, %v15_v4  ;;  %v23_v7 = vshrl.u32 %v22_v6, 7  ;;  %s156_s0 = scalar_lea.vmem %s137_s24, 768  ;;  %p161_p1 = scmp.lt.s32.totalorder %s137_s24, %s137_s24 }
   0x7   :  { %p157_p0 = scmp.ne.s32.totalorder %s137_s24, %s156_s0  ;;  %p162_p2 = scmp.lt.s32.totalorder %s156_s0, %s156_s0 }
   0x8   :  { %149 = vmatmul.mubr.msk.f32.gmra.mrb[2].mxu1 %vm32_vm0, %v17_v5  ;;  %v24_v8 = vsub.s32 0, %v23_v7  ;;  %v28_v10 = vsub.s32 1, %v23_v7 }
   0x9   :  { %p163_p3 = por %p162_p2, %p161_p1 }
   0xa   :  { %v25_v11 = vrot.slane %v20_v9, %v24_v8  ;;  %v29_v12 = vrot.slane %v20_v9, %v28_v10 }
   0xb   :  { %p164_p4 = pnand %p163_p3, %p157_p0 }
  0xd7   :  { %v114_v13 = vpop.f32.mrb[0].mxu1 }
  0xd8   :  { %v115_v14 = vadd.f32 %v114_v13, %v25_v11  ;;  %v116_v15 = vpop.f32.mrb[1].mxu1 }
  0xd9   :  { %v117_v16 = vadd.f32 %v116_v15, %v29_v12  ;;  %v108_v17 = vpop.f32.mrb[0].mxu0 }
  0xda   :  { %127 = vst [vmem:[#allocation2 + $0x10] sm:$0xff] %v115_v14  ;;  %v109_v18 = vadd.f32 %v108_v17, %v25_v11  ;;  %v110_v19 = vpop.f32.mrb[1].mxu0 }
  0xdb   :  { %128 = vst [vmem:[#allocation2 + $0x18] sm:$0xff] %v117_v16  ;;  %v111_v20 = vadd.f32 %v110_v19, %v29_v12  ;;  %v120_v21 = vpop.f32.mrb[2].mxu1 }
  0xdc   :  { %125 = vst [vmem:[#allocation2] sm:$0xff] %v109_v18  ;;  %v121_v22 = vadd.f32 %v120_v21, %v25_v11  ;;  %v122_v23 = vpop.f32.mrb[3].mxu1 }
  0xdd   :  { %126 = vst [vmem:[#allocation2 + $0x8] sm:$0xff] %v111_v20  ;;  %v123_v24 = vadd.f32 %v122_v23, %v29_v12 }
  0xde   :  { %129 = vst [vmem:[#allocation2 + $0x20] sm:$0xff] %v121_v22 }
  0xdf   :  { %130 = vst [vmem:[#allocation2 + $0x28] sm:$0xff] %v123_v24 }
  0xe0   :  { %167 = shalt.err (!%p164_p4)
}
  0xe1   :  { %s168_s26 = scalar_lea.hbm %s237_s3, 768 }
  0xe2   :  { %p169_p5 = scmp.ne.s32.totalorder %s237_s3, %s168_s26  ;;  %p172_p6 = scmp.lt.u32.totalorder %s168_s26, %s237_s3 }
  0xe4   :  { %p174_p7 = pnand %p172_p6, %p169_p5 }
  0xe6   :  { %177 = shalt.err (!%p174_p7)
}
  0xe7   :  { %s182_s4 = smov 256   ;;  %s183_s5 = smov 16  }
  0xe8   :  { %142 = dma.vmem_to_hbm [thread:$0]  %s137_s24, 768, %s237_s3, [#allocation3], %s182_s4, %s182_s4, %s183_s5  }
  0xe9   :  { %178 = dma.done.wait [#allocation3], 768  }
  0xea   :  { %179 = vsyncadd [#allocation3], 4294966528 }
  0xeb   :  { %146 = vsyncpa [#allocation3], 1 }

</bundles_post_ra>
